<compile_context>
chip_gen: v5e
topology: v5e:2x2
jax: 0.10.0
libtpu: 0.0.40
codegen_flags: <defaults>
</compile_context>

<pallas_src>
import functools
import math

import jax
import jax.numpy as jnp
from jax.experimental import pallas as pl
from jax.experimental.pallas import tpu as pltpu

_LANES = 128
_BF16_SUBLANES = 16                 # bf16 packs 16 sublanes per vreg tile
_NEG_MASK = -1e30                   # finite "-inf" baked into padded final-bias lanes


def _round_up(x, m):
    return ((x + m - 1) // m) * m


# ----------------------------------------------------------------------------
# Parameter init (deterministic, mimics torch orthogonal_ / constant_ init)
# ----------------------------------------------------------------------------
def _orthogonal(key, rows, cols, gain):
    """Orthogonal matrix of shape (rows, cols), like nn.init.orthogonal_."""
    n = max(rows, cols)
    a = jax.random.normal(key, (n, n), jnp.float32)
    q, r = jnp.linalg.qr(a)
    q = q * jnp.sign(jnp.diag(r))[None, :]
    return (gain * q[:rows, :cols]).astype(jnp.float32)


def init_categorical_net_params(key, num_inputs, num_outputs, hidden_sizes):
    """Returns a flat list [w1, b1, w2, b2, ..., w_out, b_out].

    Weights are (in, out) (transposed vs torch nn.Linear.weight).
    MLP hidden layers: orthogonal gain sqrt(2), bias 0.
    Final linear:      orthogonal gain 0.01,   bias 0.
    """
    params = []
    in_dim = num_inputs
    for h in hidden_sizes:
        key, sub = jax.random.split(key)
        w_t = _orthogonal(sub, h, in_dim, gain=math.sqrt(2.0))
        params.append(w_t.T)                       # (in, out)
        params.append(jnp.zeros((1, h), jnp.float32))
        in_dim = h
    key, sub = jax.random.split(key)
    w_t = _orthogonal(sub, num_outputs, in_dim, gain=0.01)
    params.append(w_t.T)                           # (in, num_outputs)
    params.append(jnp.zeros((1, num_outputs), jnp.float32))
    return params


def _pad_params(params):
    """Zero-pad every (in, out) to lane multiples; weights bf16, biases f32.

    The FINAL bias gets a large finite negative in its padded lanes so padded
    logit columns are masked "for free" by the bias add (no in-kernel iota/where).
    """
    padded = []
    n_layers = len(params) // 2
    for li in range(n_layers):
        w, b = params[2 * li], params[2 * li + 1]
        in_p = _round_up(w.shape[0], _LANES)
        out_p = _round_up(w.shape[1], _LANES)
        w_p = jnp.zeros((in_p, out_p), jnp.float32).at[: w.shape[0], : w.shape[1]].set(w)
        fill = _NEG_MASK if li == n_layers - 1 else 0.0
        b_p = jnp.full((1, out_p), fill, jnp.float32).at[:, : b.shape[1]].set(b)
        padded.append(w_p.astype(jnp.bfloat16))   # bf16 weights: half the HBM/VMEM bytes
        padded.append(b_p)                         # bias stays f32
    return padded


# ----------------------------------------------------------------------------
# Pallas kernel: fused MLP + final linear + categorical log-softmax
# ----------------------------------------------------------------------------
def _categorical_net_kernel(num_hidden_layers, *refs):
    # refs = (x_ref, w1, b1, ..., wH, bH, w_out, b_out, logprobs_ref, lse_ref)
    x_ref = refs[0]
    param_refs = refs[1: 1 + 2 * (num_hidden_layers + 1)]
    logprobs_ref, lse_ref = refs[-2], refs[-1]

    h = x_ref[...]                                  # bf16, fed straight to the MXU

    # Hidden layers: Linear + ReLU (bf16 operands into the MXU, f32 accumulate).
    for i in range(num_hidden_layers):
        w_ref = param_refs[2 * i]
        b_ref = param_refs[2 * i + 1]
        acc = jnp.dot(h, w_ref[...], preferred_element_type=jnp.float32)
        h = jnp.maximum(acc + b_ref[...], 0.0).astype(jnp.bfloat16)

    # Final linear -> logits.  Padded output lanes carry a ~-1e30 bias (baked in
    # by _pad_params), so no in-kernel mask is needed before the log-softmax.
    wo_ref, bo_ref = param_refs[-2], param_refs[-1]
    logits = jnp.dot(h, wo_ref[...], preferred_element_type=jnp.float32) + bo_ref[...]

    # CustomFixedCategorical(logits=x): torch stores normalized logits
    # (logits - logsumexp).  exp/log hit the EUP, max/sum hit the XLU.
    m = jnp.max(logits, axis=-1, keepdims=True)
    s = jnp.sum(jnp.exp(logits - m), axis=-1, keepdims=True)
    lse = m + jnp.log(s)
    logprobs_ref[...] = logits - lse
    lse_ref[...] = lse          # lets the wrapper reconstruct raw logits cheaply


def categorical_net_forward(x, params, num_outputs, *, tile_b=1024):
    """Fused CategoricalNet forward pass.

    Returns (raw_logits, normalized_log_probs), each of shape (B, num_outputs).
    """
    B, F = x.shape
    F_pad = _round_up(F, _LANES)
    O_pad = _round_up(num_outputs, _LANES)
    num_hidden_layers = len(params) // 2 - 1

    padded_params = _pad_params(params)
    param_bytes = sum(int(p.size) * p.dtype.itemsize for p in padded_params)
    widest = max([F_pad, O_pad] + [int(w.shape[1]) for w in padded_params[::2]])

    # ---- batch tiling: >= 2 grid steps once B > 16, so the "parallel" batch
    # axis actually spans both v7x TensorCores; multiple of 16 for bf16 packing.
    if B > _BF16_SUBLANES:
        tile_b = min(tile_b, _round_up(-(-B // 2), _BF16_SUBLANES))
    else:
        tile_b = _BF16_SUBLANES
    tile_b = max(_BF16_SUBLANES, _round_up(tile_b, _BF16_SUBLANES))

    # ---- VMEM budget from the actual chip (v5e/v6e: 128 MiB, v7x: 64 MiB/TC).
    try:
        vmem_capacity = int(pltpu.get_tpu_info().vmem_capacity_bytes)
    except Exception:  # pragma: no cover - conservative fallback
        vmem_capacity = 64 << 20
    budget = int(0.85 * vmem_capacity)

    def vmem_est(tb):
        x_io = 2 * tb * F_pad * 2                       # double-buffered bf16 input
        out_io = 2 * (tb * O_pad * 4 + tb * 4)          # double-buffered outputs
        act = 3 * tb * widest * 4                       # f32 activation slabs
        return param_bytes + x_io + out_io + act        # params single-buffered

    while tile_b > _BF16_SUBLANES and int(1.25 * vmem_est(tile_b)) > budget:
        tile_b = max(_BF16_SUBLANES, _round_up(tile_b // 2, _BF16_SUBLANES))

    B_pad = _round_up(B, tile_b)
    grid = (B_pad // tile_b,)

    # Lane-dense, sublane-aligned bf16 input (zero padding is exact for matmuls).
    x_pad = jnp.zeros((B_pad, F_pad), jnp.bfloat16).at[:B, :F].set(x.astype(jnp.bfloat16))

    kernel = functools.partial(_categorical_net_kernel, num_hidden_layers)

    x_spec = pl.BlockSpec((tile_b, F_pad), lambda i: (i, 0))
    lp_spec = pl.BlockSpec((tile_b, O_pad), lambda i: (i, 0))
    lse_spec = pl.BlockSpec((tile_b, 1), lambda i: (i, 0))

    # Cost estimate (bf16 input, single full-width output + tiny lse column).
    flops = sum(2 * B_pad * int(w.shape[0]) * int(w.shape[1]) for w in padded_params[::2])
    transcendentals = B_pad * O_pad + B_pad                      # exp + log
    bytes_accessed = B_pad * F_pad * 2 + param_bytes + B_pad * O_pad * 4 + B_pad * 4

    vmem_limit = int(min(budget, max(32 << 20, 2 * vmem_est(tile_b))))

    def make_call(single_buffer_params):
        if single_buffer_params:
            # Constant index_map + single buffering: params are fetched once and
            # never double-buffered (halves resident-param VMEM; matters on v7x).
            param_specs = [
                pl.BlockSpec(p.shape, lambda i: (0, 0), pipeline_mode=pl.Buffered(1))
                for p in padded_params
            ]
        else:
            param_specs = [pl.BlockSpec(p.shape, lambda i: (0, 0)) for p in padded_params]
        return pl.pallas_call(
            kernel,
            out_shape=(
                jax.ShapeDtypeStruct((B_pad, O_pad), jnp.float32),
                jax.ShapeDtypeStruct((B_pad, 1), jnp.float32),
            ),
            grid=grid,
            in_specs=[x_spec] + param_specs,
            out_specs=(lp_spec, lse_spec),
            compiler_params=pltpu.CompilerParams(
                dimension_semantics=("parallel",),   # shards batch tiles across v7x's 2 TCs
                vmem_limit_bytes=vmem_limit,
            ),
            cost_estimate=pl.CostEstimate(
                flops=int(flops),
                transcendentals=int(transcendentals),
                bytes_accessed=int(bytes_accessed),
            ),
        )

    try:
        log_probs_pad, lse_pad = make_call(True)(x_pad, *padded_params)
    except Exception:  # pragma: no cover - jax builds without Buffered(1) support
        log_probs_pad, lse_pad = make_call(False)(x_pad, *padded_params)

    log_probs = log_probs_pad[:B, :num_outputs]
    logits = log_probs + lse_pad[:B]           # reconstruct raw logits in the wrapper
    return logits, log_probs


# ----------------------------------------------------------------------------
# Pure-JAX reference (mirrors the kernel's bf16-at-the-MXU numerics)
# ----------------------------------------------------------------------------
def _reference_forward(x, params):
    h = x.astype(jnp.bfloat16)
    n_layers = len(params) // 2
    for i in range(n_layers - 1):
        w = params[2 * i].astype(jnp.bfloat16)
        acc = jnp.dot(h, w, preferred_element_type=jnp.float32)
        h = jnp.maximum(acc + params[2 * i + 1], 0.0).astype(jnp.bfloat16)
    w = params[-2].astype(jnp.bfloat16)
    logits = jnp.dot(h, w, preferred_element_type=jnp.float32) + params[-1]
    log_probs = logits - jax.scipy.special.logsumexp(logits, axis=-1, keepdims=True)
    return logits, log_probs


if __name__ == "__main__":
    # Small shapes consistent with the module: flat feature input.
    B = 8
    num_inputs = 32
    hidden_sizes = (64, 32)
    num_outputs = 16

    key = jax.random.PRNGKey(0)
    key, xkey, pkey = jax.random.split(key, 3)

    x = jax.random.normal(xkey, (B, num_inputs), jnp.float32)
    params = init_categorical_net_params(pkey, num_inputs, num_outputs, hidden_sizes)

    logits, log_probs = categorical_net_forward(x, params, num_outputs)
    jax.block_until_ready((logits, log_probs))

    ref_logits, ref_log_probs = _reference_forward(x, params)
    assert logits.shape == (B, num_outputs) and log_probs.shape == (B, num_outputs)
    assert jnp.allclose(logits, ref_logits, atol=1e-4, rtol=1e-4)
    assert jnp.allclose(log_probs, ref_log_probs, atol=1e-4, rtol=1e-4)
    assert jnp.allclose(jnp.exp(log_probs).sum(-1), 1.0, atol=1e-5)

    # TODO(synk): CustomFixedCategorical's sample()/mode()/entropy() are
    # distribution methods layered on the logits, not part of the forward pass.
    print("KERNEL_OK")
</pallas_src>

<mosaic_0001>
module attributes {stable_mosaic.version = 11 : i64} {
  func.func @_categorical_net_kernel(%arg0: i32, %arg1: memref<16x128xbf16, #tpu.memory_space<vmem>>, %arg2: memref<128x128xbf16, #tpu.memory_space<vmem>>, %arg3: memref<1x128xf32, #tpu.memory_space<vmem>>, %arg4: memref<128x128xbf16, #tpu.memory_space<vmem>>, %arg5: memref<1x128xf32, #tpu.memory_space<vmem>>, %arg6: memref<128x128xbf16, #tpu.memory_space<vmem>>, %arg7: memref<1x128xf32, #tpu.memory_space<vmem>>, %arg8: memref<16x128xf32, #tpu.memory_space<vmem>>, %arg9: memref<16x1xf32, #tpu.memory_space<vmem>>) attributes {dimension_semantics = [#tpu.dimension_semantics<parallel>], iteration_bounds = array<i64: 1>, scalar_prefetch = 0 : i64, scratch_operands = 0 : i64, tpu.core_type = #tpu.core_type<tc>, window_params = [{transform_indices = @transform_0, window_bounds = array<i64: 16, 128>}, {pipeline_mode = #tpu.pipeline_mode<synchronous>, transform_indices = @transform_1, window_bounds = array<i64: 128, 128>}, {pipeline_mode = #tpu.pipeline_mode<synchronous>, transform_indices = @transform_2, window_bounds = array<i64: 1, 128>}, {pipeline_mode = #tpu.pipeline_mode<synchronous>, transform_indices = @transform_3, window_bounds = array<i64: 128, 128>}, {pipeline_mode = #tpu.pipeline_mode<synchronous>, transform_indices = @transform_4, window_bounds = array<i64: 1, 128>}, {pipeline_mode = #tpu.pipeline_mode<synchronous>, transform_indices = @transform_5, window_bounds = array<i64: 128, 128>}, {pipeline_mode = #tpu.pipeline_mode<synchronous>, transform_indices = @transform_6, window_bounds = array<i64: 1, 128>}, {transform_indices = @transform_7, window_bounds = array<i64: 16, 128>}, {transform_indices = @transform_8, window_bounds = array<i64: 16, 1>}]} {
    %c0 = arith.constant 0 : index
    %c0_0 = arith.constant 0 : index
    %0 = vector.load %arg1[%c0, %c0_0] : memref<16x128xbf16, #tpu.memory_space<vmem>>, vector<16x128xbf16>
    %c0_1 = arith.constant 0 : index
    %c0_2 = arith.constant 0 : index
    %1 = vector.load %arg2[%c0_1, %c0_2] : memref<128x128xbf16, #tpu.memory_space<vmem>>, vector<128x128xbf16>
    %cst = arith.constant dense<0.000000e+00> : vector<16x128xf32>
    %2 = tpu.matmul %0, %1, %cst {dimension_numbers = #tpu.dot_dimension_numbers<[1], [0], [0], [1], [0, 0, 1, 1], [], []>} : vector<16x128xbf16>, vector<128x128xbf16>, vector<16x128xf32> -> vector<16x128xf32>
    %c0_3 = arith.constant 0 : index
    %c0_4 = arith.constant 0 : index
    %3 = vector.load %arg3[%c0_3, %c0_4] : memref<1x128xf32, #tpu.memory_space<vmem>>, vector<1x128xf32>
    %4 = vector.broadcast %3 : vector<1x128xf32> to vector<16x128xf32>
    %5 = arith.addf %2, %4 : vector<16x128xf32>
    %cst_5 = arith.constant 0.000000e+00 : f32
    %6 = vector.broadcast %cst_5 : f32 to vector<16x128xf32>
    %7 = arith.maximumf %5, %6 : vector<16x128xf32>
    %8 = arith.truncf %7 : vector<16x128xf32> to vector<16x128xbf16>
    %c0_6 = arith.constant 0 : index
    %c0_7 = arith.constant 0 : index
    %9 = vector.load %arg4[%c0_6, %c0_7] : memref<128x128xbf16, #tpu.memory_space<vmem>>, vector<128x128xbf16>
    %cst_8 = arith.constant dense<0.000000e+00> : vector<16x128xf32>
    %10 = tpu.matmul %8, %9, %cst_8 {dimension_numbers = #tpu.dot_dimension_numbers<[1], [0], [0], [1], [0, 0, 1, 1], [], []>} : vector<16x128xbf16>, vector<128x128xbf16>, vector<16x128xf32> -> vector<16x128xf32>
    %c0_9 = arith.constant 0 : index
    %c0_10 = arith.constant 0 : index
    %11 = vector.load %arg5[%c0_9, %c0_10] : memref<1x128xf32, #tpu.memory_space<vmem>>, vector<1x128xf32>
    %12 = vector.broadcast %11 : vector<1x128xf32> to vector<16x128xf32>
    %13 = arith.addf %10, %12 : vector<16x128xf32>
    %cst_11 = arith.constant 0.000000e+00 : f32
    %14 = vector.broadcast %cst_11 : f32 to vector<16x128xf32>
    %15 = arith.maximumf %13, %14 : vector<16x128xf32>
    %16 = arith.truncf %15 : vector<16x128xf32> to vector<16x128xbf16>
    %c0_12 = arith.constant 0 : index
    %c0_13 = arith.constant 0 : index
    %17 = vector.load %arg6[%c0_12, %c0_13] : memref<128x128xbf16, #tpu.memory_space<vmem>>, vector<128x128xbf16>
    %cst_14 = arith.constant dense<0.000000e+00> : vector<16x128xf32>
    %18 = tpu.matmul %16, %17, %cst_14 {dimension_numbers = #tpu.dot_dimension_numbers<[1], [0], [0], [1], [0, 0, 1, 1], [], []>} : vector<16x128xbf16>, vector<128x128xbf16>, vector<16x128xf32> -> vector<16x128xf32>
    %c0_15 = arith.constant 0 : index
    %c0_16 = arith.constant 0 : index
    %19 = vector.load %arg7[%c0_15, %c0_16] : memref<1x128xf32, #tpu.memory_space<vmem>>, vector<1x128xf32>
    %20 = vector.broadcast %19 : vector<1x128xf32> to vector<16x128xf32>
    %21 = arith.addf %18, %20 : vector<16x128xf32>
    %cst_17 = arith.constant dense<0xFF800000> : vector<16xf32>
    %22 = vector.multi_reduction <maximumf>, %21, %cst_17 [1] : vector<16x128xf32> to vector<16xf32>
    %23 = vector.shape_cast %22 : vector<16xf32> to vector<16x1xf32>
    %24 = vector.broadcast %23 : vector<16x1xf32> to vector<16x128xf32>
    %25 = arith.subf %21, %24 : vector<16x128xf32>
    %26 = math.exp %25 : vector<16x128xf32>
    %cst_18 = arith.constant dense<0.000000e+00> : vector<16xf32>
    %27 = vector.multi_reduction <add>, %26, %cst_18 [1] : vector<16x128xf32> to vector<16xf32>
    %28 = vector.shape_cast %27 : vector<16xf32> to vector<16x1xf32>
    %29 = math.log %28 : vector<16x1xf32>
    %30 = arith.addf %23, %29 : vector<16x1xf32>
    %31 = vector.broadcast %30 : vector<16x1xf32> to vector<16x128xf32>
    %32 = arith.subf %21, %31 : vector<16x128xf32>
    %c0_19 = arith.constant 0 : index
    %c0_20 = arith.constant 0 : index
    %33 = vector.load %arg8[%c0_19, %c0_20] : memref<16x128xf32, #tpu.memory_space<vmem>>, vector<16x128xf32>
    tpu.vector_store %arg8[%c0_19, %c0_20], %32 {strides = array<i32>} : memref<16x128xf32, #tpu.memory_space<vmem>>, vector<16x128xf32>,
    %c0_21 = arith.constant 0 : index
    %c0_22 = arith.constant 0 : index
    %34 = vector.load %arg9[%c0_21, %c0_22] : memref<16x1xf32, #tpu.memory_space<vmem>>, vector<16x1xf32>
    tpu.vector_store %arg9[%c0_21, %c0_22], %30 {strides = array<i32>} : memref<16x1xf32, #tpu.memory_space<vmem>>, vector<16x1xf32>,
    return
  }
  func.func @transform_0(%arg0: i32) -> (i32, i32) {
    %c0_i32 = arith.constant 0 : i32
    %c0_i32_0 = arith.constant 0 : i32
    return %arg0, %c0_i32 : i32, i32
  }
  func.func @transform_1(%arg0: i32) -> (i32, i32) {
    %c0_i32 = arith.constant 0 : i32
    %c0_i32_0 = arith.constant 0 : i32
    %c0_i32_1 = arith.constant 0 : i32
    return %c0_i32, %c0_i32_0 : i32, i32
  }
  func.func @transform_2(%arg0: i32) -> (i32, i32) {
    %c0_i32 = arith.constant 0 : i32
    %c0_i32_0 = arith.constant 0 : i32
    %c0_i32_1 = arith.constant 0 : i32
    return %c0_i32, %c0_i32_0 : i32, i32
  }
  func.func @transform_3(%arg0: i32) -> (i32, i32) {
    %c0_i32 = arith.constant 0 : i32
    %c0_i32_0 = arith.constant 0 : i32
    %c0_i32_1 = arith.constant 0 : i32
    return %c0_i32, %c0_i32_0 : i32, i32
  }
  func.func @transform_4(%arg0: i32) -> (i32, i32) {
    %c0_i32 = arith.constant 0 : i32
    %c0_i32_0 = arith.constant 0 : i32
    %c0_i32_1 = arith.constant 0 : i32
    return %c0_i32, %c0_i32_0 : i32, i32
  }
  func.func @transform_5(%arg0: i32) -> (i32, i32) {
    %c0_i32 = arith.constant 0 : i32
    %c0_i32_0 = arith.constant 0 : i32
    %c0_i32_1 = arith.constant 0 : i32
    return %c0_i32, %c0_i32_0 : i32, i32
  }
  func.func @transform_6(%arg0: i32) -> (i32, i32) {
    %c0_i32 = arith.constant 0 : i32
    %c0_i32_0 = arith.constant 0 : i32
    %c0_i32_1 = arith.constant 0 : i32
    return %c0_i32, %c0_i32_0 : i32, i32
  }
  func.func @transform_7(%arg0: i32) -> (i32, i32) {
    %c0_i32 = arith.constant 0 : i32
    %c0_i32_0 = arith.constant 0 : i32
    return %arg0, %c0_i32 : i32, i32
  }
  func.func @transform_8(%arg0: i32) -> (i32, i32) {
    %c0_i32 = arith.constant 0 : i32
    %c0_i32_0 = arith.constant 0 : i32
    return %arg0, %c0_i32 : i32, i32
  }
}

module attributes {stable_mosaic.version = 11 : i64} {
  func.func @_categorical_net_kernel(%arg0: i32, %arg1: memref<16x128xbf16, #tpu.memory_space<vmem>>, %arg2: memref<128x128xbf16, #tpu.memory_space<vmem>>, %arg3: memref<1x128xf32, #tpu.memory_space<vmem>>, %arg4: memref<128x128xbf16, #tpu.memory_space<vmem>>, %arg5: memref<1x128xf32, #tpu.memory_space<vmem>>, %arg6: memref<128x128xbf16, #tpu.memory_space<vmem>>, %arg7: memref<1x128xf32, #tpu.memory_space<vmem>>, %arg8: memref<16x128xf32, #tpu.memory_space<vmem>>, %arg9: memref<16x1xf32, #tpu.memory_space<vmem>>) attributes {dimension_semantics = [#tpu.dimension_semantics<parallel>], iteration_bounds = array<i64: 1>, scalar_prefetch = 0 : i64, scratch_operands = 0 : i64, tpu.core_type = #tpu.core_type<tc>, window_params = [{transform_indices = @transform_0, window_bounds = array<i64: 16, 128>}, {pipeline_mode = #tpu.pipeline_mode<synchronous>, transform_indices = @transform_1, window_bounds = array<i64: 128, 128>}, {pipeline_mode = #tpu.pipeline_mode<synchronous>, transform_indices = @transform_2, window_bounds = array<i64: 1, 128>}, {pipeline_mode = #tpu.pipeline_mode<synchronous>, transform_indices = @transform_3, window_bounds = array<i64: 128, 128>}, {pipeline_mode = #tpu.pipeline_mode<synchronous>, transform_indices = @transform_4, window_bounds = array<i64: 1, 128>}, {pipeline_mode = #tpu.pipeline_mode<synchronous>, transform_indices = @transform_5, window_bounds = array<i64: 128, 128>}, {pipeline_mode = #tpu.pipeline_mode<synchronous>, transform_indices = @transform_6, window_bounds = array<i64: 1, 128>}, {transform_indices = @transform_7, window_bounds = array<i64: 16, 128>}, {transform_indices = @transform_8, window_bounds = array<i64: 16, 1>}]} {
    %c0 = arith.constant 0 : index
    %c0_0 = arith.constant 0 : index
    %0 = vector.load %arg1[%c0, %c0_0] : memref<16x128xbf16, #tpu.memory_space<vmem>>, vector<16x128xbf16>
    %c0_1 = arith.constant 0 : index
    %c0_2 = arith.constant 0 : index
    %1 = vector.load %arg2[%c0_1, %c0_2] : memref<128x128xbf16, #tpu.memory_space<vmem>>, vector<128x128xbf16>
    %cst = arith.constant dense<0.000000e+00> : vector<16x128xf32>
    %2 = tpu.matmul %0, %1, %cst {dimension_numbers = #tpu.dot_dimension_numbers<[1], [0], [0], [1], [0, 0, 1, 1], [], []>} : vector<16x128xbf16>, vector<128x128xbf16>, vector<16x128xf32> -> vector<16x128xf32>
    %c0_3 = arith.constant 0 : index
    %c0_4 = arith.constant 0 : index
    %3 = vector.load %arg3[%c0_3, %c0_4] : memref<1x128xf32, #tpu.memory_space<vmem>>, vector<1x128xf32>
    %4 = vector.broadcast %3 : vector<1x128xf32> to vector<16x128xf32>
    %5 = arith.addf %2, %4 : vector<16x128xf32>
    %cst_5 = arith.constant 0.000000e+00 : f32
    %6 = vector.broadcast %cst_5 : f32 to vector<16x128xf32>
    %7 = arith.maximumf %5, %6 : vector<16x128xf32>
    %8 = arith.truncf %7 : vector<16x128xf32> to vector<16x128xbf16>
    %c0_6 = arith.constant 0 : index
    %c0_7 = arith.constant 0 : index
    %9 = vector.load %arg4[%c0_6, %c0_7] : memref<128x128xbf16, #tpu.memory_space<vmem>>, vector<128x128xbf16>
    %cst_8 = arith.constant dense<0.000000e+00> : vector<16x128xf32>
    %10 = tpu.matmul %8, %9, %cst_8 {dimension_numbers = #tpu.dot_dimension_numbers<[1], [0], [0], [1], [0, 0, 1, 1], [], []>} : vector<16x128xbf16>, vector<128x128xbf16>, vector<16x128xf32> -> vector<16x128xf32>
    %c0_9 = arith.constant 0 : index
    %c0_10 = arith.constant 0 : index
    %11 = vector.load %arg5[%c0_9, %c0_10] : memref<1x128xf32, #tpu.memory_space<vmem>>, vector<1x128xf32>
    %12 = vector.broadcast %11 : vector<1x128xf32> to vector<16x128xf32>
    %13 = arith.addf %10, %12 : vector<16x128xf32>
    %cst_11 = arith.constant 0.000000e+00 : f32
    %14 = vector.broadcast %cst_11 : f32 to vector<16x128xf32>
    %15 = arith.maximumf %13, %14 : vector<16x128xf32>
    %16 = arith.truncf %15 : vector<16x128xf32> to vector<16x128xbf16>
    %c0_12 = arith.constant 0 : index
    %c0_13 = arith.constant 0 : index
    %17 = vector.load %arg6[%c0_12, %c0_13] : memref<128x128xbf16, #tpu.memory_space<vmem>>, vector<128x128xbf16>
    %cst_14 = arith.constant dense<0.000000e+00> : vector<16x128xf32>
    %18 = tpu.matmul %16, %17, %cst_14 {dimension_numbers = #tpu.dot_dimension_numbers<[1], [0], [0], [1], [0, 0, 1, 1], [], []>} : vector<16x128xbf16>, vector<128x128xbf16>, vector<16x128xf32> -> vector<16x128xf32>
    %c0_15 = arith.constant 0 : index
    %c0_16 = arith.constant 0 : index
    %19 = vector.load %arg7[%c0_15, %c0_16] : memref<1x128xf32, #tpu.memory_space<vmem>>, vector<1x128xf32>
    %20 = vector.broadcast %19 : vector<1x128xf32> to vector<16x128xf32>
    %21 = arith.addf %18, %20 : vector<16x128xf32>
    %cst_17 = arith.constant dense<0xFF800000> : vector<16xf32>
    %22 = vector.multi_reduction <maximumf>, %21, %cst_17 [1] : vector<16x128xf32> to vector<16xf32>
    %23 = vector.shape_cast %22 : vector<16xf32> to vector<16x1xf32>
    %24 = vector.broadcast %23 : vector<16x1xf32> to vector<16x128xf32>
    %25 = arith.subf %21, %24 : vector<16x128xf32>
    %26 = math.exp %25 : vector<16x128xf32>
    %cst_18 = arith.constant dense<0.000000e+00> : vector<16xf32>
    %27 = vector.multi_reduction <add>, %26, %cst_18 [1] : vector<16x128xf32> to vector<16xf32>
    %28 = vector.shape_cast %27 : vector<16xf32> to vector<16x1xf32>
    %29 = math.log %28 : vector<16x1xf32>
    %30 = arith.addf %23, %29 : vector<16x1xf32>
    %31 = vector.broadcast %30 : vector<16x1xf32> to vector<16x128xf32>
    %32 = arith.subf %21, %31 : vector<16x128xf32>
    %c0_19 = arith.constant 0 : index
    %c0_20 = arith.constant 0 : index
    %33 = vector.load %arg8[%c0_19, %c0_20] : memref<16x128xf32, #tpu.memory_space<vmem>>, vector<16x128xf32>
    tpu.vector_store %arg8[%c0_19, %c0_20], %32 {strides = array<i32>} : memref<16x128xf32, #tpu.memory_space<vmem>>, vector<16x128xf32>,
    %c0_21 = arith.constant 0 : index
    %c0_22 = arith.constant 0 : index
    %34 = vector.load %arg9[%c0_21, %c0_22] : memref<16x1xf32, #tpu.memory_space<vmem>>, vector<16x1xf32>
    tpu.vector_store %arg9[%c0_21, %c0_22], %30 {strides = array<i32>} : memref<16x1xf32, #tpu.memory_space<vmem>>, vector<16x1xf32>,
    return
  }
  func.func @transform_0(%arg0: i32) -> (i32, i32) {
    %c0_i32 = arith.constant 0 : i32
    %c0_i32_0 = arith.constant 0 : i32
    return %arg0, %c0_i32 : i32, i32
  }
  func.func @transform_1(%arg0: i32) -> (i32, i32) {
    %c0_i32 = arith.constant 0 : i32
    %c0_i32_0 = arith.constant 0 : i32
    %c0_i32_1 = arith.constant 0 : i32
    return %c0_i32, %c0_i32_0 : i32, i32
  }
  func.func @transform_2(%arg0: i32) -> (i32, i32) {
    %c0_i32 = arith.constant 0 : i32
    %c0_i32_0 = arith.constant 0 : i32
    %c0_i32_1 = arith.constant 0 : i32
    return %c0_i32, %c0_i32_0 : i32, i32
  }
  func.func @transform_3(%arg0: i32) -> (i32, i32) {
    %c0_i32 = arith.constant 0 : i32
    %c0_i32_0 = arith.constant 0 : i32
    %c0_i32_1 = arith.constant 0 : i32
    return %c0_i32, %c0_i32_0 : i32, i32
  }
  func.func @transform_4(%arg0: i32) -> (i32, i32) {
    %c0_i32 = arith.constant 0 : i32
    %c0_i32_0 = arith.constant 0 : i32
    %c0_i32_1 = arith.constant 0 : i32
    return %c0_i32, %c0_i32_0 : i32, i32
  }
  func.func @transform_5(%arg0: i32) -> (i32, i32) {
    %c0_i32 = arith.constant 0 : i32
    %c0_i32_0 = arith.constant 0 : i32
    %c0_i32_1 = arith.constant 0 : i32
    return %c0_i32, %c0_i32_0 : i32, i32
  }
  func.func @transform_6(%arg0: i32) -> (i32, i32) {
    %c0_i32 = arith.constant 0 : i32
    %c0_i32_0 = arith.constant 0 : i32
    %c0_i32_1 = arith.constant 0 : i32
    return %c0_i32, %c0_i32_0 : i32, i32
  }
  func.func @transform_7(%arg0: i32) -> (i32, i32) {
    %c0_i32 = arith.constant 0 : i32
    %c0_i32_0 = arith.constant 0 : i32
    return %arg0, %c0_i32 : i32, i32
  }
  func.func @transform_8(%arg0: i32) -> (i32, i32) {
    %c0_i32 = arith.constant 0 : i32
    %c0_i32_0 = arith.constant 0 : i32
    return %arg0, %c0_i32 : i32, i32
  }
}

</mosaic_0001>

<bundles_post_ra>
// kernel: tpu_custom_call.1
= control target key start
LH: loop header
LB: loop body
LE: loop exit
PB: predicated region body
PF: predicated region fallthrough
CT: control target
= control target key end

     0   :  { %14 = vsyncpa [#allocation3], 0  ;;  %s761_s0 = inlined_call_operand.hbm [shape: bf16[16,128], index: 0, kind: input, shape index: {}]   ;;  %s762_s1 = inlined_call_operand.hbm [shape: bf16[128,128], index: 1, kind: input, shape index: {}]   ;;  %s763_s2 = inlined_call_operand.vmem [shape: f32[1,128], index: 2, kind: input, shape index: {}]   ;;  %s764_s3 = inlined_call_operand.hbm [shape: bf16[128,128], index: 3, kind: input, shape index: {}]   ;;  %s765_s4 = inlined_call_operand.vmem [shape: f32[1,128], index: 4, kind: input, shape index: {}]   ;;  %s766_s5 = inlined_call_operand.hbm [shape: bf16[128,128], index: 5, kind: input, shape index: {}]   ;;  %s767_s6 = inlined_call_operand.vmem [shape: f32[1,128], index: 6, kind: input, shape index: {}]   ;;  %s768_s7 = inlined_call_operand.hbm [shape: f32[16,128], index: 7, kind: output, shape index: {0}]   ;;  %s769_s8 = inlined_call_operand.vmem [shape: f32[16,1], index: 8, kind: output, shape index: {1}]  }
   0x1   :  { %15 = vsyncpa [#allocation6], 0 }
   0x2   :  { %16 = vsyncpa [#allocation9], 0 }
   0x3   :  { %17 = vsyncpa [#allocation4], 0  ;;  %s35_s29 = sshll.u32 %s762_s1, 4  ;;  %s677_s30 = smov [#allocation5]   ;;  %s36_s29 = int_to_ptr.hbm [resolvable:$true] %s35_s29 }
   0x4   :  { %s37_s9 = sshll.u32 %s677_s30, 4  ;;  %s22_s12 = sshll.u32 %s761_s0, 4  ;;  %s38_s9 = int_to_ptr.vmem [resolvable:$true] %s37_s9  ;;  %s23_s12 = int_to_ptr.hbm [resolvable:$true] %s22_s12 }
   0x5   :  { %s678_s13 = smov 64   ;;  %s679_s14 = smov 4  }
   0x6   :  { %43 = dma.hbm_to_vmem [thread:$0]  %s36_s29, 1024, %s38_s9, [#allocation6], %s678_s13, %s678_s13, %s679_s14  }
   0x7   :  { %s680_s15 = smov [#allocation2]   ;;  %s50_s19 = sshll.u32 %s764_s3, 4  ;;  %s51_s19 = int_to_ptr.hbm [resolvable:$true] %s50_s19 }
   0x8   :  { %s24_s16 = sshll.u32 %s680_s15, 4  ;;  %s65_s21 = sshll.u32 %s766_s5, 4  ;;  %s25_s16 = int_to_ptr.vmem [resolvable:$true] %s24_s16  ;;  %s66_s21 = int_to_ptr.hbm [resolvable:$true] %s65_s21 }
   0x9   :  { %30 = dma.hbm_to_vmem [thread:$0]  %s23_s12, 128, %s25_s16, [#allocation3], %s678_s13, %s678_s13, %s679_s14  }
   0xa   :  { %s681_s22 = smov [#allocation7]   ;;  %s682_s0 = smov [#allocation8]  }
   0xb   :  { %s52_s23 = sshll.u32 %s681_s22, 4  ;;  %s67_s24 = sshll.u32 %s682_s0, 4  ;;  %s53_s23 = int_to_ptr.vmem [resolvable:$true] %s52_s23  ;;  %s68_s24 = int_to_ptr.vmem [resolvable:$true] %s67_s24 }
   0xc   :  { %58 = dma.hbm_to_vmem [thread:$0]  %s51_s19, 1024, %s53_s23, [#allocation6], %s678_s13, %s678_s13, %s679_s14  }
   0xd   :  { %73 = dma.hbm_to_vmem [thread:$0]  %s66_s21, 1024, %s68_s24, [#allocation9], %s678_s13, %s678_s13, %s679_s14  }
   0xe   :  { %669 = dma.done.wait [#allocation3], 128  }
   0xf   :  { %670 = vsyncadd [#allocation3], 4294967168 }
  0x10   :  { %671 = dma.done.wait [#allocation6], 2048  }
  0x11   :  { %672 = vsyncadd [#allocation6], 4294965248 }
  0x12   :  { %673 = dma.done.wait [#allocation9], 1024  }
  0x13   :  { %674 = vsyncadd [#allocation9], 4294966272  ;;  %v512_v0 = vld [vmem:[#allocation5 + $0x38] sm:$0xff]  ;;  %v511_v1 = vld [vmem:[#allocation5 + $0x30] sm:$0xff]  ;;  %vm376_vm0 = vcmask 7168   ;;  %s683_s28 = smov [#allocation10]  }
  0x14   :  { %168 = vmatpush.bf16.msra.mxu0 %v512_v0  ;;  %v520_v2 = vld [vmem:[#allocation7 + $0x38] sm:$0xff]  ;;  %v519_v3 = vld [vmem:[#allocation7 + $0x30] sm:$0xff]  ;;  %v510_v4 = vld [vmem:[#allocation5 + $0x28] sm:$0xff]  ;;  %s383_s29 = sshll.u32 %s683_s28, 4  ;;  %s385_s10 = sshll.u32 %s768_s7, 4  ;;  %s384_s29 = int_to_ptr.vmem [resolvable:$true] %s383_s29  ;;  %s386_s10 = int_to_ptr.hbm [resolvable:$true] %s385_s10 }
  0x15   :  { %253 = vmatpush.bf16.msra.mxu1 %v520_v2  ;;  %v518_v5 = vld [vmem:[#allocation7 + $0x28] sm:$0xff]  ;;  %v509_v6 = vld [vmem:[#allocation5 + $0x20] sm:$0xff]  ;;  %v508_v8 = vld [vmem:[#allocation5 + $0x18] sm:$0xff]  ;;  %s684_s13 = smov 128   ;;  %s685_s14 = smov 8  }
  0x16   :  { %v517_v7 = vld [vmem:[#allocation7 + $0x20] sm:$0xff]  ;;  %v507_v9 = vld [vmem:[#allocation5 + $0x10] sm:$0xff]  ;;  %v506_v10 = vld [vmem:[#allocation5 + $0x8] sm:$0xff] }
  0x17   :  { %v505_v11 = vld [vmem:[#allocation5] sm:$0xff]  ;;  %v504_v12 = vld [vmem:[#allocation2] sm:$0xff]  ;;  %v515_v14 = vld [vmem:[#allocation7 + $0x10] sm:$0xff] }
  0x18   :  { %169 = vmatpush.bf16.msra.mxu0 %v511_v1  ;;  %v516_v13 = vld [vmem:[#allocation7 + $0x18] sm:$0xff]  ;;  %v514_v15 = vld [vmem:[#allocation7 + $0x8] sm:$0xff]  ;;  %v513_v16 = vld [vmem:[#allocation7] sm:$0xff] }
  0x19   :  { %254 = vmatpush.bf16.msra.mxu1 %v519_v3  ;;  %v528_v17 = vld [vmem:[#allocation8 + $0x38] sm:$0xff]  ;;  %v527_v18 = vld [vmem:[#allocation8 + $0x30] sm:$0xff]  ;;  %v526_v19 = vld [vmem:[#allocation8 + $0x28] sm:$0xff] }
  0x1a   :  { %338 = vmatpush.bf16.msra.mxu2 %v528_v17  ;;  %v525_v20 = vld [vmem:[#allocation8 + $0x20] sm:$0xff]  ;;  %v538_v22 = vld [vmem:[%s763_s2] ss:$0 sm:$0xff]  ;;  %v523_v30 = vld [vmem:[#allocation8 + $0x10] sm:$0xff] }
  0x1b   :  { %v524_v29 = vld [vmem:[#allocation8 + $0x18] sm:$0xff]  ;;  %v522_v31 = vld [vmem:[#allocation8 + $0x8] sm:$0xff]  ;;  %v521_v32 = vld [vmem:[#allocation8] sm:$0xff] }
  0x1c   :  { %170 = vmatpush.bf16.msra.mxu0 %v510_v4  ;;  %v539_v34 = vld [vmem:[%s765_s4] ss:$0 sm:$0xff] }
  0x1d   :  { %255 = vmatpush.bf16.msra.mxu1 %v518_v5  ;;  %v540_v41 = vld [vmem:[%s767_s6] ss:$0 sm:$0xff] }
  0x1e   :  { %339 = vmatpush.bf16.msra.mxu2 %v527_v18 }
  0x20   :  { %171 = vmatpush.bf16.msra.mxu0 %v509_v6 }
  0x21   :  { %256 = vmatpush.bf16.msra.mxu1 %v517_v7 }
  0x22   :  { %340 = vmatpush.bf16.msra.mxu2 %v526_v19 }
  0x24   :  { %172 = vmatpush.bf16.msra.mxu0 %v508_v8 }
  0x25   :  { %257 = vmatpush.bf16.msra.mxu1 %v516_v13 }
  0x26   :  { %341 = vmatpush.bf16.msra.mxu2 %v525_v20 }
  0x28   :  { %173 = vmatpush.bf16.msra.mxu0 %v507_v9 }
  0x29   :  { %258 = vmatpush.bf16.msra.mxu1 %v515_v14 }
  0x2a   :  { %342 = vmatpush.bf16.msra.mxu2 %v524_v29 }
  0x2c   :  { %174 = vmatpush.bf16.msra.mxu0 %v506_v10 }
  0x2d   :  { %259 = vmatpush.bf16.msra.mxu1 %v514_v15 }
  0x2e   :  { %343 = vmatpush.bf16.msra.mxu2 %v523_v30 }
  0x30   :  { %175 = vmatpush.bf16.msra.mxu0 %v505_v11 }
  0x31   :  { %260 = vmatpush.bf16.msra.mxu1 %v513_v16 }
  0x32   :  { %344 = vmatpush.bf16.msra.mxu2 %v522_v31 }
  0x33   :  { %176 = vmatmul.bf16.vlgmr.msra.gmra.mxu0 %v504_v12 }
  0x36   :  { %345 = vmatpush.bf16.msra.mxu2 %v521_v32 }
  0xb0   :  { %v177_v21 = vpop.f32.mrf.mxu0 }
  0xb1   :  { %v178_v23 = vadd.f32 %v538_v22, %v177_v21 }
  0xb3   :  { %v182_v26 = vmax.f32 %v178_v23, 0.0 }
  0xb8   :  { %v179_v24 = vpop.f32.mrf.mxu0 }
  0xb9   :  { %v180_v25 = vadd.f32 %v538_v22, %v179_v24 }
  0xbb   :  { %v183_v27 = vmax.f32 %v180_v25, 0.0 }
  0xbd   :  { %v184_v28 = vpack.c.bf16 %v183_v27, %v182_v26 }
  0xbf   :  { %261 = vmatmul.bf16.vlgmr.msra.gmra.mxu1 %v184_v28 }
 0x13c   :  { %v262_v33 = vpop.f32.mrf.mxu1 }
 0x13d   :  { %v263_v35 = vadd.f32 %v539_v34, %v262_v33 }
 0x13f   :  { %v267_v38 = vmax.f32 %v263_v35, 0.0 }
 0x144   :  { %v264_v36 = vpop.f32.mrf.mxu1 }
 0x145   :  { %v265_v37 = vadd.f32 %v539_v34, %v264_v36 }
 0x147   :  { %v268_v39 = vmax.f32 %v265_v37, 0.0 }
 0x149   :  { %v269_v40 = vpack.c.bf16 %v268_v39, %v267_v38 }
 0x14b   :  { %346 = vmatmul.bf16.vlgmr.msra.gmra.mxu2 %v269_v40 }
 0x1ce   :  { %v347_v42 = vpop.f32.mrf.mxu2 }
 0x1cf   :  { %v348_v43 = vadd.f32 %v540_v41, %v347_v42 }
 0x1d1   :  { %352 = vmax.xlane.f32.xlu0 %v348_v43 }
 0x1d6   :  { %v349_v44 = vpop.f32.mrf.mxu2 }
 0x1d7   :  { %v350_v45 = vadd.f32 %v540_v41, %v349_v44 }
 0x1d9   :  { %354 = vmax.xlane.f32.xlu0 %v350_v45 }
 0x244   :  { %v353_v46 = vpop.xlane.xlu0 %352 }
 0x245   :  { %v356_v47 = vsub.f32 %v348_v43, %v353_v46 }
 0x247   :  { %v358_v48 = vmul.f32 1.442695, %v356_v47 }
 0x249   :  { %541 = vpow2.f32 %v358_v48 }
 0x24c   :  { %v355_v49 = vpop.xlane.xlu0 %354 }
 0x24d   :  { %v357_v50 = vsub.f32 %v350_v45, %v355_v49 }
 0x24f   :  { %v542_v51 = vpop.eup %541  ;;  %v360_v52 = vmul.f32 1.442695, %v357_v50 }
 0x250   :  { %362 = vadd.xlane.f32.xlu1 %v542_v51 }
 0x251   :  { %543 = vpow2.f32 %v360_v52 }
 0x257   :  { %v544_v53 = vpop.eup %543 }
 0x258   :  { %364 = vadd.xlane.f32.xlu1 %v544_v53 }
 0x2c3   :  { %v363_v54 = vpop.xlane.xlu1 %362 }
 0x2c4   :  { %545 = vlog2.f32 %v363_v54 }
 0x2ca   :  { %v546_v55 = vpop.eup %545 }
 0x2cb   :  { %v367_v56 = vmul.f32 0.6931472, %v546_v55  ;;  %v365_v57 = vpop.xlane.xlu1 %364 }
 0x2cc   :  { %547 = vlog2.f32 %v365_v57 }
 0x2cd   :  { %v370_v58 = vadd.f32 %v367_v56, %v353_v46 }
 0x2cf   :  { %v372_v59 = vsub.f32 %v348_v43, %v370_v58  ;;  %377 = vst.msk [vmem:[%s769_s8] sm:$0xff] %vm376_vm0, %v370_v58 }
 0x2d1   :  { %374 = vst [vmem:[#allocation10] sm:$0xff] %v372_v59 }
 0x2d2   :  { %v548_v60 = vpop.eup %547 }
 0x2d3   :  { %v369_v61 = vmul.f32 0.6931472, %v548_v60 }
 0x2d5   :  { %v371_v62 = vadd.f32 %v369_v61, %v355_v49 }
 0x2d7   :  { %v373_v63 = vsub.f32 %v350_v45, %v371_v62  ;;  %378 = vst.msk [vmem:[%s769_s8 + $0x8] sm:$0xff] %vm376_vm0, %v371_v62 }
 0x2d9   :  { %375 = vst [vmem:[#allocation10 + $0x8] sm:$0xff] %v373_v63 }
 0x2da   :  { %391 = dma.vmem_to_hbm [thread:$0]  %s384_s29, 256, %s386_s10, [#allocation4], %s684_s13, %s684_s13, %s685_s14  }
 0x2db   :  { %675 = dma.done.wait [#allocation4], 256  }
 0x2dc   :  { %676 = vsyncadd [#allocation4], 4294967040 }
 0x2dd   :  { %400 = vsyncpa [#allocation3], 1 }
 0x2de   :  { %401 = vsyncpa [#allocation6], 1 }
 0x2df   :  { %402 = vsyncpa [#allocation9], 1 }
 0x2e0   :  { %403 = vsyncpa [#allocation4], 1 }

// kernel: tpu_custom_call.1
= control target key start
LH: loop header
LB: loop body
LE: loop exit
PB: predicated region body
PF: predicated region fallthrough
CT: control target
= control target key end

     0   :  { %14 = vsyncpa [#allocation3], 0  ;;  %s761_s0 = inlined_call_operand.hbm [shape: bf16[16,128], index: 0, kind: input, shape index: {}]   ;;  %s762_s1 = inlined_call_operand.hbm [shape: bf16[128,128], index: 1, kind: input, shape index: {}]   ;;  %s763_s2 = inlined_call_operand.vmem [shape: f32[1,128], index: 2, kind: input, shape index: {}]   ;;  %s764_s3 = inlined_call_operand.hbm [shape: bf16[128,128], index: 3, kind: input, shape index: {}]   ;;  %s765_s4 = inlined_call_operand.vmem [shape: f32[1,128], index: 4, kind: input, shape index: {}]   ;;  %s766_s5 = inlined_call_operand.hbm [shape: bf16[128,128], index: 5, kind: input, shape index: {}]   ;;  %s767_s6 = inlined_call_operand.vmem [shape: f32[1,128], index: 6, kind: input, shape index: {}]   ;;  %s768_s7 = inlined_call_operand.hbm [shape: f32[16,128], index: 7, kind: output, shape index: {0}]   ;;  %s769_s8 = inlined_call_operand.vmem [shape: f32[16,1], index: 8, kind: output, shape index: {1}]  }
   0x1   :  { %15 = vsyncpa [#allocation6], 0 }
   0x2   :  { %16 = vsyncpa [#allocation9], 0 }
   0x3   :  { %17 = vsyncpa [#allocation4], 0  ;;  %s35_s29 = sshll.u32 %s762_s1, 4  ;;  %s677_s30 = smov [#allocation5]   ;;  %s36_s29 = int_to_ptr.hbm [resolvable:$true] %s35_s29 }
   0x4   :  { %s37_s9 = sshll.u32 %s677_s30, 4  ;;  %s22_s12 = sshll.u32 %s761_s0, 4  ;;  %s38_s9 = int_to_ptr.vmem [resolvable:$true] %s37_s9  ;;  %s23_s12 = int_to_ptr.hbm [resolvable:$true] %s22_s12 }
   0x5   :  { %s678_s13 = smov 64   ;;  %s679_s14 = smov 4  }
   0x6   :  { %43 = dma.hbm_to_vmem [thread:$0]  %s36_s29, 1024, %s38_s9, [#allocation6], %s678_s13, %s678_s13, %s679_s14  }
   0x7   :  { %s680_s15 = smov [#allocation2]   ;;  %s50_s19 = sshll.u32 %s764_s3, 4  ;;  %s51_s19 = int_to_ptr.hbm [resolvable:$true] %s50_s19 }
   0x8   :  { %s24_s16 = sshll.u32 %s680_s15, 4  ;;  %s65_s21 = sshll.u32 %s766_s5, 4  ;;  %s25_s16 = int_to_ptr.vmem [resolvable:$true] %s24_s16  ;;  %s66_s21 = int_to_ptr.hbm [resolvable:$true] %s65_s21 }
   0x9   :  { %30 = dma.hbm_to_vmem [thread:$0]  %s23_s12, 128, %s25_s16, [#allocation3], %s678_s13, %s678_s13, %s679_s14  }
   0xa   :  { %s681_s22 = smov [#allocation7]   ;;  %s682_s0 = smov [#allocation8]  }
   0xb   :  { %s52_s23 = sshll.u32 %s681_s22, 4  ;;  %s67_s24 = sshll.u32 %s682_s0, 4  ;;  %s53_s23 = int_to_ptr.vmem [resolvable:$true] %s52_s23  ;;  %s68_s24 = int_to_ptr.vmem [resolvable:$true] %s67_s24 }
   0xc   :  { %58 = dma.hbm_to_vmem [thread:$0]  %s51_s19, 1024, %s53_s23, [#allocation6], %s678_s13, %s678_s13, %s679_s14  }
   0xd   :  { %73 = dma.hbm_to_vmem [thread:$0]  %s66_s21, 1024, %s68_s24, [#allocation9], %s678_s13, %s678_s13, %s679_s14  }
   0xe   :  { %669 = dma.done.wait [#allocation3], 128  }
   0xf   :  { %670 = vsyncadd [#allocation3], 4294967168 }
  0x10   :  { %671 = dma.done.wait [#allocation6], 2048  }
  0x11   :  { %672 = vsyncadd [#allocation6], 4294965248 }
  0x12   :  { %673 = dma.done.wait [#allocation9], 1024  }
  0x13   :  { %674 = vsyncadd [#allocation9], 4294966272  ;;  %v512_v0 = vld [vmem:[#allocation5 + $0x38] sm:$0xff]  ;;  %v511_v1 = vld [vmem:[#allocation5 + $0x30] sm:$0xff]  ;;  %vm376_vm0 = vcmask 7168   ;;  %s683_s28 = smov [#allocation10]  }
  0x14   :  { %168 = vmatpush.bf16.msra.mxu0 %v512_v0  ;;  %v520_v2 = vld [vmem:[#allocation7 + $0x38] sm:$0xff]  ;;  %v519_v3 = vld [vmem:[#allocation7 + $0x30] sm:$0xff]  ;;  %v510_v4 = vld [vmem:[#allocation5 + $0x28] sm:$0xff]  ;;  %s383_s29 = sshll.u32 %s683_s28, 4  ;;  %s385_s10 = sshll.u32 %s768_s7, 4  ;;  %s384_s29 = int_to_ptr.vmem [resolvable:$true] %s383_s29  ;;  %s386_s10 = int_to_ptr.hbm [resolvable:$true] %s385_s10 }
  0x15   :  { %253 = vmatpush.bf16.msra.mxu1 %v520_v2  ;;  %v518_v5 = vld [vmem:[#allocation7 + $0x28] sm:$0xff]  ;;  %v509_v6 = vld [vmem:[#allocation5 + $0x20] sm:$0xff]  ;;  %v508_v8 = vld [vmem:[#allocation5 + $0x18] sm:$0xff]  ;;  %s684_s13 = smov 128   ;;  %s685_s14 = smov 8  }
  0x16   :  { %v517_v7 = vld [vmem:[#allocation7 + $0x20] sm:$0xff]  ;;  %v507_v9 = vld [vmem:[#allocation5 + $0x10] sm:$0xff]  ;;  %v506_v10 = vld [vmem:[#allocation5 + $0x8] sm:$0xff] }
  0x17   :  { %v505_v11 = vld [vmem:[#allocation5] sm:$0xff]  ;;  %v504_v12 = vld [vmem:[#allocation2] sm:$0xff]  ;;  %v515_v14 = vld [vmem:[#allocation7 + $0x10] sm:$0xff] }
  0x18   :  { %169 = vmatpush.bf16.msra.mxu0 %v511_v1  ;;  %v516_v13 = vld [vmem:[#allocation7 + $0x18] sm:$0xff]  ;;  %v514_v15 = vld [vmem:[#allocation7 + $0x8] sm:$0xff]  ;;  %v513_v16 = vld [vmem:[#allocation7] sm:$0xff] }
  0x19   :  { %254 = vmatpush.bf16.msra.mxu1 %v519_v3  ;;  %v528_v17 = vld [vmem:[#allocation8 + $0x38] sm:$0xff]  ;;  %v527_v18 = vld [vmem:[#allocation8 + $0x30] sm:$0xff]  ;;  %v526_v19 = vld [vmem:[#allocation8 + $0x28] sm:$0xff] }
  0x1a   :  { %338 = vmatpush.bf16.msra.mxu2 %v528_v17  ;;  %v525_v20 = vld [vmem:[#allocation8 + $0x20] sm:$0xff]  ;;  %v538_v22 = vld [vmem:[%s763_s2] ss:$0 sm:$0xff]  ;;  %v523_v30 = vld [vmem:[#allocation8 + $0x10] sm:$0xff] }
  0x1b   :  { %v524_v29 = vld [vmem:[#allocation8 + $0x18] sm:$0xff]  ;;  %v522_v31 = vld [vmem:[#allocation8 + $0x8] sm:$0xff]  ;;  %v521_v32 = vld [vmem:[#allocation8] sm:$0xff] }
  0x1c   :  { %170 = vmatpush.bf16.msra.mxu0 %v510_v4  ;;  %v539_v34 = vld [vmem:[%s765_s4] ss:$0 sm:$0xff] }
  0x1d   :  { %255 = vmatpush.bf16.msra.mxu1 %v518_v5  ;;  %v540_v41 = vld [vmem:[%s767_s6] ss:$0 sm:$0xff] }
  0x1e   :  { %339 = vmatpush.bf16.msra.mxu2 %v527_v18 }
  0x20   :  { %171 = vmatpush.bf16.msra.mxu0 %v509_v6 }
  0x21   :  { %256 = vmatpush.bf16.msra.mxu1 %v517_v7 }
  0x22   :  { %340 = vmatpush.bf16.msra.mxu2 %v526_v19 }
  0x24   :  { %172 = vmatpush.bf16.msra.mxu0 %v508_v8 }
  0x25   :  { %257 = vmatpush.bf16.msra.mxu1 %v516_v13 }
  0x26   :  { %341 = vmatpush.bf16.msra.mxu2 %v525_v20 }
  0x28   :  { %173 = vmatpush.bf16.msra.mxu0 %v507_v9 }
  0x29   :  { %258 = vmatpush.bf16.msra.mxu1 %v515_v14 }
  0x2a   :  { %342 = vmatpush.bf16.msra.mxu2 %v524_v29 }
  0x2c   :  { %174 = vmatpush.bf16.msra.mxu0 %v506_v10 }
  0x2d   :  { %259 = vmatpush.bf16.msra.mxu1 %v514_v15 }
  0x2e   :  { %343 = vmatpush.bf16.msra.mxu2 %v523_v30 }
  0x30   :  { %175 = vmatpush.bf16.msra.mxu0 %v505_v11 }
  0x31   :  { %260 = vmatpush.bf16.msra.mxu1 %v513_v16 }
  0x32   :  { %344 = vmatpush.bf16.msra.mxu2 %v522_v31 }
  0x33   :  { %176 = vmatmul.bf16.vlgmr.msra.gmra.mxu0 %v504_v12 }
  0x36   :  { %345 = vmatpush.bf16.msra.mxu2 %v521_v32 }
  0xb0   :  { %v177_v21 = vpop.f32.mrf.mxu0 }
  0xb1   :  { %v178_v23 = vadd.f32 %v538_v22, %v177_v21 }
  0xb3   :  { %v182_v26 = vmax.f32 %v178_v23, 0.0 }
  0xb8   :  { %v179_v24 = vpop.f32.mrf.mxu0 }
  0xb9   :  { %v180_v25 = vadd.f32 %v538_v22, %v179_v24 }
  0xbb   :  { %v183_v27 = vmax.f32 %v180_v25, 0.0 }
  0xbd   :  { %v184_v28 = vpack.c.bf16 %v183_v27, %v182_v26 }
  0xbf   :  { %261 = vmatmul.bf16.vlgmr.msra.gmra.mxu1 %v184_v28 }
 0x13c   :  { %v262_v33 = vpop.f32.mrf.mxu1 }
 0x13d   :  { %v263_v35 = vadd.f32 %v539_v34, %v262_v33 }
 0x13f   :  { %v267_v38 = vmax.f32 %v263_v35, 0.0 }
 0x144   :  { %v264_v36 = vpop.f32.mrf.mxu1 }
 0x145   :  { %v265_v37 = vadd.f32 %v539_v34, %v264_v36 }
 0x147   :  { %v268_v39 = vmax.f32 %v265_v37, 0.0 }
 0x149   :  { %v269_v40 = vpack.c.bf16 %v268_v39, %v267_v38 }
 0x14b   :  { %346 = vmatmul.bf16.vlgmr.msra.gmra.mxu2 %v269_v40 }
 0x1ce   :  { %v347_v42 = vpop.f32.mrf.mxu2 }
 0x1cf   :  { %v348_v43 = vadd.f32 %v540_v41, %v347_v42 }
 0x1d1   :  { %352 = vmax.xlane.f32.xlu0 %v348_v43 }
 0x1d6   :  { %v349_v44 = vpop.f32.mrf.mxu2 }
 0x1d7   :  { %v350_v45 = vadd.f32 %v540_v41, %v349_v44 }
 0x1d9   :  { %354 = vmax.xlane.f32.xlu0 %v350_v45 }
 0x244   :  { %v353_v46 = vpop.xlane.xlu0 %352 }
 0x245   :  { %v356_v47 = vsub.f32 %v348_v43, %v353_v46 }
 0x247   :  { %v358_v48 = vmul.f32 1.442695, %v356_v47 }
 0x249   :  { %541 = vpow2.f32 %v358_v48 }
 0x24c   :  { %v355_v49 = vpop.xlane.xlu0 %354 }
 0x24d   :  { %v357_v50 = vsub.f32 %v350_v45, %v355_v49 }
 0x24f   :  { %v542_v51 = vpop.eup %541  ;;  %v360_v52 = vmul.f32 1.442695, %v357_v50 }
 0x250   :  { %362 = vadd.xlane.f32.xlu1 %v542_v51 }
 0x251   :  { %543 = vpow2.f32 %v360_v52 }
 0x257   :  { %v544_v53 = vpop.eup %543 }
 0x258   :  { %364 = vadd.xlane.f32.xlu1 %v544_v53 }
 0x2c3   :  { %v363_v54 = vpop.xlane.xlu1 %362 }
 0x2c4   :  { %545 = vlog2.f32 %v363_v54 }
 0x2ca   :  { %v546_v55 = vpop.eup %545 }
 0x2cb   :  { %v367_v56 = vmul.f32 0.6931472, %v546_v55  ;;  %v365_v57 = vpop.xlane.xlu1 %364 }
 0x2cc   :  { %547 = vlog2.f32 %v365_v57 }
 0x2cd   :  { %v370_v58 = vadd.f32 %v367_v56, %v353_v46 }
 0x2cf   :  { %v372_v59 = vsub.f32 %v348_v43, %v370_v58  ;;  %377 = vst.msk [vmem:[%s769_s8] sm:$0xff] %vm376_vm0, %v370_v58 }
 0x2d1   :  { %374 = vst [vmem:[#allocation10] sm:$0xff] %v372_v59 }
 0x2d2   :  { %v548_v60 = vpop.eup %547 }
 0x2d3   :  { %v369_v61 = vmul.f32 0.6931472, %v548_v60 }
 0x2d5   :  { %v371_v62 = vadd.f32 %v369_v61, %v355_v49 }
 0x2d7   :  { %v373_v63 = vsub.f32 %v350_v45, %v371_v62  ;;  %378 = vst.msk [vmem:[%s769_s8 + $0x8] sm:$0xff] %vm376_vm0, %v371_v62 }
 0x2d9   :  { %375 = vst [vmem:[#allocation10 + $0x8] sm:$0xff] %v373_v63 }
 0x2da   :  { %391 = dma.vmem_to_hbm [thread:$0]  %s384_s29, 256, %s386_s10, [#allocation4], %s684_s13, %s684_s13, %s685_s14  }
 0x2db   :  { %675 = dma.done.wait [#allocation4], 256  }
 0x2dc   :  { %676 = vsyncadd [#allocation4], 4294967040 }
 0x2dd   :  { %400 = vsyncpa [#allocation3], 1 }
 0x2de   :  { %401 = vsyncpa [#allocation6], 1 }
 0x2df   :  { %402 = vsyncpa [#allocation9], 1 }
 0x2e0   :  { %403 = vsyncpa [#allocation4], 1 }

</bundles_post_ra>
